<compile_context>
chip_gen: v5e
topology: v5e:2x2
jax: 0.10.0
libtpu: 0.0.40
codegen_flags: <defaults>
</compile_context>

<pallas_src>
import jax
import jax.numpy as jnp
from jax import lax
from jax.experimental import pallas as pl
from jax.experimental.pallas import tpu as pltpu

# ---- static problem sizes (small, consistent with the module's forward) ----
CIN, H, W = 4, 16, 16                # input channels / spatial
HW = H * W                           # 256
F_FEAT = 32                          # backbone in_features (stand-in)
EMB = 32                             # params.embedding_size
NUM_CLASSES = 16                     # params.num_classes
BN_EPS = 1e-5                        # nn.BatchNorm1d default eps
NORM_EPS = 1e-12                     # F.normalize default eps

TB = 8                               # batch tile per grid step (sublane-aligned output)

# ---- packed parameter slab layout: (P_ROWS, 128) f32, one DMA per call ----
P_LANES = 128
R_WC = 0                             # rows 0:32   -> lanes 0:4 = wc.T (F_FEAT,CIN); lane 4 = conv bias
R_W1 = 32                            # rows 32:64  -> w1 (F_FEAT, EMB)
R_WN = 64                            # rows 64:96  -> wn_n (EMB, NUM_CLASSES), pre-normalized per class
R_VEC = 96                           # row 96 b1, row 97 bn_scale, row 98 bn_shift
P_ROWS = 104                         # padded to a multiple of 8 sublanes
OUT_LANES = 128                      # lane-dense output slab width


def embedding_net_kernel(x_ref, p_ref, out_ref):
    # ---------------- backbone stand-in: 1x1 conv (+bias) + ReLU + global-avg-pool -------
    # TODO(synk): the real module uses a pretrained timm backbone; replaced here with a
    # deterministic 1x1-conv + ReLU + global-average-pool stand-in giving F_FEAT features.
    wc_t = p_ref[R_WC:R_WC + F_FEAT, 0:CIN]              # (32, 4)  = conv weight^T
    bc = p_ref[R_WC:R_WC + F_FEAT, CIN:CIN + 1]          # (32, 1)  conv bias column

    cols = []
    for s in range(TB):                                  # static unroll over the tile
        xs = x_ref[s]                                    # (CIN, HW) = (4, 256)
        hs = jnp.dot(wc_t, xs, preferred_element_type=jnp.float32) + bc   # (32, 256)
        hs = jnp.maximum(hs, 0.0)
        cols.append(jnp.sum(hs, axis=-1, keepdims=True))                  # (32, 1)
    feat_t = jnp.concatenate(cols, axis=-1) * jnp.float32(1.0 / HW)       # (32, TB)

    # ---------------- neck: Linear -> ReLU -> BatchNorm1d (eval, folded) -----------------
    w1 = p_ref[R_W1:R_W1 + F_FEAT, 0:EMB]                # (32, 32)
    b1 = p_ref[R_VEC + 0:R_VEC + 1, 0:EMB]               # (1, 32)
    bn_scale = p_ref[R_VEC + 1:R_VEC + 2, 0:EMB]         # (1, 32)
    bn_shift = p_ref[R_VEC + 2:R_VEC + 3, 0:EMB]         # (1, 32)

    # z = feat_t.T @ w1 via lhs-contraction dot (no explicit transpose materialized)
    z = lax.dot_general(feat_t, w1, (((0,), (0,)), ((), ())),
                        preferred_element_type=jnp.float32)               # (TB, EMB)
    z = jnp.maximum(z + b1, 0.0)
    emb = z * bn_scale + bn_shift                                          # (TB, EMB)

    # ---------------- NormLinear head: cosine logits (wn pre-normalized) -----------------
    # F.normalize: x / max(||x||, eps)  ==  x * rsqrt(max(||x||^2, eps^2))
    inv_norm = lax.rsqrt(jnp.maximum(jnp.sum(emb * emb, axis=-1, keepdims=True),
                                     jnp.float32(NORM_EPS * NORM_EPS)))
    emb_n = emb * inv_norm
    wn_n = p_ref[R_WN:R_WN + EMB, 0:NUM_CLASSES]                           # (32, 16)
    logits = jnp.dot(emb_n, wn_n, preferred_element_type=jnp.float32)      # (TB, 16)

    # ---------------- single lane-dense output slab: [0:16]=logits, [16:48]=embeddings ---
    pad = jnp.zeros((TB, OUT_LANES - NUM_CLASSES - EMB), jnp.float32)
    out_ref[...] = jnp.concatenate([logits, emb, pad], axis=-1)            # (TB, 128)


def pack_params(params):
    """Hoist all input-independent math out of the kernel and pack into one slab."""
    wc, bc, w1, b1, gamma, beta, rmean, rvar, wn = params
    # fold BatchNorm1d (eval mode) running stats into scale/shift
    bn_scale = gamma * lax.rsqrt(rvar + BN_EPS)                            # (1, EMB)
    bn_shift = beta - rmean * bn_scale                                     # (1, EMB)
    # pre-normalize NormLinear weight (F.normalize(weight) per class == columns of weight.T)
    wn_norm = jnp.sqrt(jnp.sum(wn * wn, axis=0, keepdims=True))
    wn_n = wn / jnp.maximum(wn_norm, NORM_EPS)                             # (EMB, NUM_CLASSES)

    slab = jnp.zeros((P_ROWS, P_LANES), jnp.float32)
    slab = slab.at[R_WC:R_WC + F_FEAT, 0:CIN].set(wc.T)                    # conv weight^T
    slab = slab.at[R_WC:R_WC + F_FEAT, CIN].set(bc.reshape(F_FEAT))        # conv bias column
    slab = slab.at[R_W1:R_W1 + F_FEAT, 0:EMB].set(w1)
    slab = slab.at[R_WN:R_WN + EMB, 0:NUM_CLASSES].set(wn_n)
    slab = slab.at[R_VEC + 0, 0:EMB].set(b1.reshape(EMB))
    slab = slab.at[R_VEC + 1, 0:EMB].set(bn_scale.reshape(EMB))
    slab = slab.at[R_VEC + 2, 0:EMB].set(bn_shift.reshape(EMB))
    return slab


def embedding_net_forward(x_nchw, packed_params, return_embedding=True):
    n = x_nchw.shape[0]
    n_pad = ((n + TB - 1) // TB) * TB
    # pure reshape (no transpose, no bias-row concat): NCHW -> (N, CIN, HW)
    x3 = x_nchw.reshape(n, CIN, HW).astype(jnp.float32)
    if n_pad != n:
        x3 = jnp.concatenate(
            [x3, jnp.zeros((n_pad - n, CIN, HW), jnp.float32)], axis=0)

    out = pl.pallas_call(
        embedding_net_kernel,
        grid=(n_pad // TB,),
        in_specs=[
            pl.BlockSpec((TB, CIN, HW), lambda i: (i, 0, 0)),       # activations, per tile
            pl.BlockSpec((P_ROWS, P_LANES), lambda i: (0, 0)),      # param slab, resident
        ],
        out_specs=pl.BlockSpec((TB, OUT_LANES), lambda i: (i, 0)),
        out_shape=jax.ShapeDtypeStruct((n_pad, OUT_LANES), jnp.float32),
        compiler_params=pltpu.CompilerParams(
            dimension_semantics=("parallel",)),                     # batch tiles -> 2 TCs on v7x
    )(x3, packed_params)

    logits = out[:n, :NUM_CLASSES]
    emb = out[:n, NUM_CLASSES:NUM_CLASSES + EMB]
    if return_embedding:
        return {'cosine_logits': logits, 'embeddings': emb}
    return {'cosine_logits': logits}


def make_params(key):
    ks = jax.random.split(key, 10)
    wc = jax.random.normal(ks[0], (CIN, F_FEAT), jnp.float32) * 0.1       # 1x1 conv weight
    bc = jax.random.normal(ks[1], (1, F_FEAT), jnp.float32) * 0.01        # 1x1 conv bias
    w1 = jax.random.normal(ks[2], (F_FEAT, EMB), jnp.float32) * 0.1       # neck Linear weight (in,out)
    b1 = jax.random.normal(ks[3], (1, EMB), jnp.float32) * 0.01           # neck Linear bias
    gamma = 1.0 + 0.1 * jax.random.normal(ks[4], (1, EMB), jnp.float32)   # BN weight
    beta = 0.1 * jax.random.normal(ks[5], (1, EMB), jnp.float32)          # BN bias
    rmean = 0.1 * jax.random.normal(ks[6], (1, EMB), jnp.float32)         # BN running_mean
    rvar = 0.5 + jax.random.uniform(ks[7], (1, EMB), jnp.float32)         # BN running_var (>0)
    wn = jax.random.normal(ks[8], (EMB, NUM_CLASSES), jnp.float32) * 0.1  # NormLinear weight.T
    return (wc, bc, w1, b1, gamma, beta, rmean, rvar, wn)


if __name__ == "__main__":
    key = jax.random.PRNGKey(0)
    kx, kp = jax.random.split(key)

    N = 16                                                  # 2 batch tiles -> grid=(2,), parallel
    x = jax.random.normal(kx, (N, CIN, H, W), jnp.float32)  # NCHW, like PyTorch
    params = make_params(kp)
    packed = pack_params(params)

    out = embedding_net_forward(x, packed, return_embedding=True)
    jax.block_until_ready(out)

    assert out['cosine_logits'].shape == (N, NUM_CLASSES)
    assert out['embeddings'].shape == (N, EMB)
    print("KERNEL_OK")
</pallas_src>

<mosaic_0001>
module attributes {stable_mosaic.version = 11 : i64} {
  func.func @embedding_net_kernel(%arg0: i32, %arg1: memref<8x4x256xf32, #tpu.memory_space<vmem>>, %arg2: memref<104x128xf32, #tpu.memory_space<vmem>>, %arg3: memref<8x128xf32, #tpu.memory_space<vmem>>) attributes {dimension_semantics = [#tpu.dimension_semantics<parallel>], iteration_bounds = array<i64: 2>, scalar_prefetch = 0 : i64, scratch_operands = 0 : i64, tpu.core_type = #tpu.core_type<tc>, window_params = [{transform_indices = @transform_0, window_bounds = array<i64: 8, 4, 256>}, {pipeline_mode = #tpu.pipeline_mode<synchronous>, transform_indices = @transform_1, window_bounds = array<i64: 104, 128>}, {transform_indices = @transform_2, window_bounds = array<i64: 8, 128>}]} {
    %c0 = arith.constant 0 : index
    %c0_0 = arith.constant 0 : index
    %0 = vector.load %arg2[%c0, %c0_0] : memref<104x128xf32, #tpu.memory_space<vmem>>, vector<32x4xf32>
    %c0_1 = arith.constant 0 : index
    %c4 = arith.constant 4 : index
    %1 = vector.load %arg2[%c0_1, %c4] : memref<104x128xf32, #tpu.memory_space<vmem>>, vector<32x1xf32>
    %c0_2 = arith.constant 0 : index
    %c0_3 = arith.constant 0 : index
    %c0_4 = arith.constant 0 : index
    %2 = vector.load %arg1[%c0_2, %c0_3, %c0_4] : memref<8x4x256xf32, #tpu.memory_space<vmem>>, vector<1x4x256xf32>
    %3 = vector.shape_cast %2 : vector<1x4x256xf32> to vector<4x256xf32>
    %cst = arith.constant dense<0.000000e+00> : vector<32x256xf32>
    %4 = tpu.matmul %0, %3, %cst {dimension_numbers = #tpu.dot_dimension_numbers<[1], [0], [0], [1], [0, 0, 1, 1], [], []>} : vector<32x4xf32>, vector<4x256xf32>, vector<32x256xf32> -> vector<32x256xf32>
    %5 = vector.broadcast %1 : vector<32x1xf32> to vector<32x256xf32>
    %6 = arith.addf %4, %5 : vector<32x256xf32>
    %cst_5 = arith.constant 0.000000e+00 : f32
    %7 = vector.broadcast %cst_5 : f32 to vector<32x256xf32>
    %8 = arith.maximumf %6, %7 : vector<32x256xf32>
    %cst_6 = arith.constant dense<0.000000e+00> : vector<32xf32>
    %9 = vector.multi_reduction <add>, %8, %cst_6 [1] : vector<32x256xf32> to vector<32xf32>
    %10 = vector.shape_cast %9 : vector<32xf32> to vector<32x1xf32>
    %c1 = arith.constant 1 : index
    %c0_7 = arith.constant 0 : index
    %c0_8 = arith.constant 0 : index
    %11 = vector.load %arg1[%c1, %c0_7, %c0_8] : memref<8x4x256xf32, #tpu.memory_space<vmem>>, vector<1x4x256xf32>
    %12 = vector.shape_cast %11 : vector<1x4x256xf32> to vector<4x256xf32>
    %cst_9 = arith.constant dense<0.000000e+00> : vector<32x256xf32>
    %13 = tpu.matmul %0, %12, %cst_9 {dimension_numbers = #tpu.dot_dimension_numbers<[1], [0], [0], [1], [0, 0, 1, 1], [], []>} : vector<32x4xf32>, vector<4x256xf32>, vector<32x256xf32> -> vector<32x256xf32>
    %14 = vector.broadcast %1 : vector<32x1xf32> to vector<32x256xf32>
    %15 = arith.addf %13, %14 : vector<32x256xf32>
    %cst_10 = arith.constant 0.000000e+00 : f32
    %16 = vector.broadcast %cst_10 : f32 to vector<32x256xf32>
    %17 = arith.maximumf %15, %16 : vector<32x256xf32>
    %cst_11 = arith.constant dense<0.000000e+00> : vector<32xf32>
    %18 = vector.multi_reduction <add>, %17, %cst_11 [1] : vector<32x256xf32> to vector<32xf32>
    %19 = vector.shape_cast %18 : vector<32xf32> to vector<32x1xf32>
    %c2 = arith.constant 2 : index
    %c0_12 = arith.constant 0 : index
    %c0_13 = arith.constant 0 : index
    %20 = vector.load %arg1[%c2, %c0_12, %c0_13] : memref<8x4x256xf32, #tpu.memory_space<vmem>>, vector<1x4x256xf32>
    %21 = vector.shape_cast %20 : vector<1x4x256xf32> to vector<4x256xf32>
    %cst_14 = arith.constant dense<0.000000e+00> : vector<32x256xf32>
    %22 = tpu.matmul %0, %21, %cst_14 {dimension_numbers = #tpu.dot_dimension_numbers<[1], [0], [0], [1], [0, 0, 1, 1], [], []>} : vector<32x4xf32>, vector<4x256xf32>, vector<32x256xf32> -> vector<32x256xf32>
    %23 = vector.broadcast %1 : vector<32x1xf32> to vector<32x256xf32>
    %24 = arith.addf %22, %23 : vector<32x256xf32>
    %cst_15 = arith.constant 0.000000e+00 : f32
    %25 = vector.broadcast %cst_15 : f32 to vector<32x256xf32>
    %26 = arith.maximumf %24, %25 : vector<32x256xf32>
    %cst_16 = arith.constant dense<0.000000e+00> : vector<32xf32>
    %27 = vector.multi_reduction <add>, %26, %cst_16 [1] : vector<32x256xf32> to vector<32xf32>
    %28 = vector.shape_cast %27 : vector<32xf32> to vector<32x1xf32>
    %c3 = arith.constant 3 : index
    %c0_17 = arith.constant 0 : index
    %c0_18 = arith.constant 0 : index
    %29 = vector.load %arg1[%c3, %c0_17, %c0_18] : memref<8x4x256xf32, #tpu.memory_space<vmem>>, vector<1x4x256xf32>
    %30 = vector.shape_cast %29 : vector<1x4x256xf32> to vector<4x256xf32>
    %cst_19 = arith.constant dense<0.000000e+00> : vector<32x256xf32>
    %31 = tpu.matmul %0, %30, %cst_19 {dimension_numbers = #tpu.dot_dimension_numbers<[1], [0], [0], [1], [0, 0, 1, 1], [], []>} : vector<32x4xf32>, vector<4x256xf32>, vector<32x256xf32> -> vector<32x256xf32>
    %32 = vector.broadcast %1 : vector<32x1xf32> to vector<32x256xf32>
    %33 = arith.addf %31, %32 : vector<32x256xf32>
    %cst_20 = arith.constant 0.000000e+00 : f32
    %34 = vector.broadcast %cst_20 : f32 to vector<32x256xf32>
    %35 = arith.maximumf %33, %34 : vector<32x256xf32>
    %cst_21 = arith.constant dense<0.000000e+00> : vector<32xf32>
    %36 = vector.multi_reduction <add>, %35, %cst_21 [1] : vector<32x256xf32> to vector<32xf32>
    %37 = vector.shape_cast %36 : vector<32xf32> to vector<32x1xf32>
    %c4_22 = arith.constant 4 : index
    %c0_23 = arith.constant 0 : index
    %c0_24 = arith.constant 0 : index
    %38 = vector.load %arg1[%c4_22, %c0_23, %c0_24] : memref<8x4x256xf32, #tpu.memory_space<vmem>>, vector<1x4x256xf32>
    %39 = vector.shape_cast %38 : vector<1x4x256xf32> to vector<4x256xf32>
    %cst_25 = arith.constant dense<0.000000e+00> : vector<32x256xf32>
    %40 = tpu.matmul %0, %39, %cst_25 {dimension_numbers = #tpu.dot_dimension_numbers<[1], [0], [0], [1], [0, 0, 1, 1], [], []>} : vector<32x4xf32>, vector<4x256xf32>, vector<32x256xf32> -> vector<32x256xf32>
    %41 = vector.broadcast %1 : vector<32x1xf32> to vector<32x256xf32>
    %42 = arith.addf %40, %41 : vector<32x256xf32>
    %cst_26 = arith.constant 0.000000e+00 : f32
    %43 = vector.broadcast %cst_26 : f32 to vector<32x256xf32>
    %44 = arith.maximumf %42, %43 : vector<32x256xf32>
    %cst_27 = arith.constant dense<0.000000e+00> : vector<32xf32>
    %45 = vector.multi_reduction <add>, %44, %cst_27 [1] : vector<32x256xf32> to vector<32xf32>
    %46 = vector.shape_cast %45 : vector<32xf32> to vector<32x1xf32>
    %c5 = arith.constant 5 : index
    %c0_28 = arith.constant 0 : index
    %c0_29 = arith.constant 0 : index
    %47 = vector.load %arg1[%c5, %c0_28, %c0_29] : memref<8x4x256xf32, #tpu.memory_space<vmem>>, vector<1x4x256xf32>
    %48 = vector.shape_cast %47 : vector<1x4x256xf32> to vector<4x256xf32>
    %cst_30 = arith.constant dense<0.000000e+00> : vector<32x256xf32>
    %49 = tpu.matmul %0, %48, %cst_30 {dimension_numbers = #tpu.dot_dimension_numbers<[1], [0], [0], [1], [0, 0, 1, 1], [], []>} : vector<32x4xf32>, vector<4x256xf32>, vector<32x256xf32> -> vector<32x256xf32>
    %50 = vector.broadcast %1 : vector<32x1xf32> to vector<32x256xf32>
    %51 = arith.addf %49, %50 : vector<32x256xf32>
    %cst_31 = arith.constant 0.000000e+00 : f32
    %52 = vector.broadcast %cst_31 : f32 to vector<32x256xf32>
    %53 = arith.maximumf %51, %52 : vector<32x256xf32>
    %cst_32 = arith.constant dense<0.000000e+00> : vector<32xf32>
    %54 = vector.multi_reduction <add>, %53, %cst_32 [1] : vector<32x256xf32> to vector<32xf32>
    %55 = vector.shape_cast %54 : vector<32xf32> to vector<32x1xf32>
    %c6 = arith.constant 6 : index
    %c0_33 = arith.constant 0 : index
    %c0_34 = arith.constant 0 : index
    %56 = vector.load %arg1[%c6, %c0_33, %c0_34] : memref<8x4x256xf32, #tpu.memory_space<vmem>>, vector<1x4x256xf32>
    %57 = vector.shape_cast %56 : vector<1x4x256xf32> to vector<4x256xf32>
    %cst_35 = arith.constant dense<0.000000e+00> : vector<32x256xf32>
    %58 = tpu.matmul %0, %57, %cst_35 {dimension_numbers = #tpu.dot_dimension_numbers<[1], [0], [0], [1], [0, 0, 1, 1], [], []>} : vector<32x4xf32>, vector<4x256xf32>, vector<32x256xf32> -> vector<32x256xf32>
    %59 = vector.broadcast %1 : vector<32x1xf32> to vector<32x256xf32>
    %60 = arith.addf %58, %59 : vector<32x256xf32>
    %cst_36 = arith.constant 0.000000e+00 : f32
    %61 = vector.broadcast %cst_36 : f32 to vector<32x256xf32>
    %62 = arith.maximumf %60, %61 : vector<32x256xf32>
    %cst_37 = arith.constant dense<0.000000e+00> : vector<32xf32>
    %63 = vector.multi_reduction <add>, %62, %cst_37 [1] : vector<32x256xf32> to vector<32xf32>
    %64 = vector.shape_cast %63 : vector<32xf32> to vector<32x1xf32>
    %c7 = arith.constant 7 : index
    %c0_38 = arith.constant 0 : index
    %c0_39 = arith.constant 0 : index
    %65 = vector.load %arg1[%c7, %c0_38, %c0_39] : memref<8x4x256xf32, #tpu.memory_space<vmem>>, vector<1x4x256xf32>
    %66 = vector.shape_cast %65 : vector<1x4x256xf32> to vector<4x256xf32>
    %cst_40 = arith.constant dense<0.000000e+00> : vector<32x256xf32>
    %67 = tpu.matmul %0, %66, %cst_40 {dimension_numbers = #tpu.dot_dimension_numbers<[1], [0], [0], [1], [0, 0, 1, 1], [], []>} : vector<32x4xf32>, vector<4x256xf32>, vector<32x256xf32> -> vector<32x256xf32>
    %68 = vector.broadcast %1 : vector<32x1xf32> to vector<32x256xf32>
    %69 = arith.addf %67, %68 : vector<32x256xf32>
    %cst_41 = arith.constant 0.000000e+00 : f32
    %70 = vector.broadcast %cst_41 : f32 to vector<32x256xf32>
    %71 = arith.maximumf %69, %70 : vector<32x256xf32>
    %cst_42 = arith.constant dense<0.000000e+00> : vector<32xf32>
    %72 = vector.multi_reduction <add>, %71, %cst_42 [1] : vector<32x256xf32> to vector<32xf32>
    %73 = vector.shape_cast %72 : vector<32xf32> to vector<32x1xf32>
    %74 = tpu.concatenate %10, %19, %28, %37, %46, %55, %64, %73 in 1 : vector<32x1xf32>, vector<32x1xf32>, vector<32x1xf32>, vector<32x1xf32>, vector<32x1xf32>, vector<32x1xf32>, vector<32x1xf32>, vector<32x1xf32> -> vector<32x8xf32>
    %cst_43 = arith.constant 3.906250e-03 : f32
    %75 = vector.broadcast %cst_43 : f32 to vector<32x8xf32>
    %76 = arith.mulf %74, %75 : vector<32x8xf32>
    %c32 = arith.constant 32 : index
    %c0_44 = arith.constant 0 : index
    %77 = vector.load %arg2[%c32, %c0_44] : memref<104x128xf32, #tpu.memory_space<vmem>>, vector<32x32xf32>
    %c96 = arith.constant 96 : index
    %c0_45 = arith.constant 0 : index
    %78 = vector.load %arg2[%c96, %c0_45] : memref<104x128xf32, #tpu.memory_space<vmem>>, vector<1x32xf32>
    %c97 = arith.constant 97 : index
    %c0_46 = arith.constant 0 : index
    %79 = vector.load %arg2[%c97, %c0_46] : memref<104x128xf32, #tpu.memory_space<vmem>>, vector<1x32xf32>
    %c98 = arith.constant 98 : index
    %c0_47 = arith.constant 0 : index
    %80 = vector.load %arg2[%c98, %c0_47] : memref<104x128xf32, #tpu.memory_space<vmem>>, vector<1x32xf32>
    %cst_48 = arith.constant dense<0.000000e+00> : vector<8x32xf32>
    %81 = tpu.matmul %76, %77, %cst_48 {dimension_numbers = #tpu.dot_dimension_numbers<[0], [0], [1], [1], [0, 1, 1, 1], [], []>} : vector<32x8xf32>, vector<32x32xf32>, vector<8x32xf32> -> vector<8x32xf32>
    %82 = vector.broadcast %78 : vector<1x32xf32> to vector<8x32xf32>
    %83 = arith.addf %81, %82 : vector<8x32xf32>
    %cst_49 = arith.constant 0.000000e+00 : f32
    %84 = vector.broadcast %cst_49 : f32 to vector<8x32xf32>
    %85 = arith.maximumf %83, %84 : vector<8x32xf32>
    %86 = vector.broadcast %79 : vector<1x32xf32> to vector<8x32xf32>
    %87 = arith.mulf %85, %86 : vector<8x32xf32>
    %88 = vector.broadcast %80 : vector<1x32xf32> to vector<8x32xf32>
    %89 = arith.addf %87, %88 : vector<8x32xf32>
    %90 = arith.mulf %89, %89 : vector<8x32xf32>
    %cst_50 = arith.constant dense<0.000000e+00> : vector<8xf32>
    %91 = vector.multi_reduction <add>, %90, %cst_50 [1] : vector<8x32xf32> to vector<8xf32>
    %92 = vector.shape_cast %91 : vector<8xf32> to vector<8x1xf32>
    %cst_51 = arith.constant 1.000000e-24 : f32
    %93 = vector.broadcast %cst_51 : f32 to vector<8x1xf32>
    %94 = arith.maximumf %92, %93 : vector<8x1xf32>
    %95 = math.rsqrt %94 : vector<8x1xf32>
    %96 = vector.broadcast %95 : vector<8x1xf32> to vector<8x32xf32>
    %97 = arith.mulf %89, %96 : vector<8x32xf32>
    %c64 = arith.constant 64 : index
    %c0_52 = arith.constant 0 : index
    %98 = vector.load %arg2[%c64, %c0_52] : memref<104x128xf32, #tpu.memory_space<vmem>>, vector<32x16xf32>
    %cst_53 = arith.constant dense<0.000000e+00> : vector<8x16xf32>
    %99 = tpu.matmul %97, %98, %cst_53 {dimension_numbers = #tpu.dot_dimension_numbers<[1], [0], [0], [1], [0, 0, 1, 1], [], []>} : vector<8x32xf32>, vector<32x16xf32>, vector<8x16xf32> -> vector<8x16xf32>
    %cst_54 = arith.constant 0.000000e+00 : f32
    %100 = vector.broadcast %cst_54 : f32 to vector<8x80xf32>
    %101 = tpu.concatenate %99, %89, %100 in 1 : vector<8x16xf32>, vector<8x32xf32>, vector<8x80xf32> -> vector<8x128xf32>
    %c0_55 = arith.constant 0 : index
    %c0_56 = arith.constant 0 : index
    %102 = vector.load %arg3[%c0_55, %c0_56] : memref<8x128xf32, #tpu.memory_space<vmem>>, vector<8x128xf32>
    tpu.vector_store %arg3[%c0_55, %c0_56], %101 {strides = array<i32>} : memref<8x128xf32, #tpu.memory_space<vmem>>, vector<8x128xf32>,
    return
  }
  func.func @transform_0(%arg0: i32) -> (i32, i32, i32) {
    %c0_i32 = arith.constant 0 : i32
    %c0_i32_0 = arith.constant 0 : i32
    %c0_i32_1 = arith.constant 0 : i32
    return %arg0, %c0_i32, %c0_i32_0 : i32, i32, i32
  }
  func.func @transform_1(%arg0: i32) -> (i32, i32) {
    %c0_i32 = arith.constant 0 : i32
    %c0_i32_0 = arith.constant 0 : i32
    %c0_i32_1 = arith.constant 0 : i32
    return %c0_i32, %c0_i32_0 : i32, i32
  }
  func.func @transform_2(%arg0: i32) -> (i32, i32) {
    %c0_i32 = arith.constant 0 : i32
    %c0_i32_0 = arith.constant 0 : i32
    return %arg0, %c0_i32 : i32, i32
  }
}

</mosaic_0001>

<bundles_post_ra>
// kernel: tpu_custom_call.1
= control target key start
LH: loop header
LB: loop body
LE: loop exit
PB: predicated region body
PF: predicated region fallthrough
CT: control target
= control target key end

     0   :  { %7 = vsyncpa [#allocation3], 0  ;;  %s1917_s0 = inlined_call_operand.hbm [shape: f32[16,4,256], index: 0, kind: input, shape index: {}]   ;;  %s1918_s1 = inlined_call_operand.hbm [shape: f32[104,128], index: 1, kind: input, shape index: {}]   ;;  %s1919_s2 = inlined_call_operand.hbm [shape: f32[16,128], index: 2, kind: output, shape index: {}]  }
   0x1   :  { %9 = vsyncpa [#allocation3 + $0x1], 0 }
   0x2   :  { %10 = vsyncpa [#allocation6], 0 }
   0x3   :  { %11 = vsyncpa [#allocation4], 0 }
   0x4   :  { %13 = vsyncpa [#allocation4 + $0x1], 0  ;;  %s1503_s9 = smov 0   ;;  %s1505_s10 = smov 0  }
   0x5   :  { %s1507_s11 = smov 0   ;;  %s1509_s12 = smov 0  }
   0x6 LB: > { %s1524_s13 = sadd.s32 4294967295, %s1481_s12   ;;  %s1175_s14 = sadd.s32 4294967294, %s1481_s12   ;;  %s1481_s12 = sphi %s1509_s12, %s1929_s12   ;;  %s1477_s11 = sphi %s1507_s11, %s1928_s11   ;;  %s1473_s10 = sphi %s1505_s10, %s1927_s10   ;;  %s1469_s9 = sphi %s1503_s9, %s1926_s9  }
   0x7   : > { %p39_p0 = scmp.ne.s32.totalorder %s1473_s10, %s1469_s9  ;;  %p40_p1 = scmp.eq.s32.totalorder %s1524_s13, 0 }
   0x8   : > { %p84_p2 = scmp.eq.s32.totalorder %s1524_s13, 1  ;;  %p90_p3 = scmp.eq.s32.totalorder %s1175_s14, 1 }
   0x9   : > { %p1533_p4 = por %p40_p1, %p39_p0  ;;  %p1176_p5 = scmp.ge.s32.totalorder %s1481_s12, 1 }
   0xa   : > { %p1538_p6 = por %p90_p3, %p39_p0  ;;  %p97_p7 = scmp.lt.s32.totalorder %s1481_s12, 3 }
   0xb   : > { %s108_s19 = sshll.u32 %s1918_s1, 4  ;;  %s1483_s21 = smov [#allocation5]   ;;  %s109_s19 = int_to_ptr.hbm [resolvable:$true] %s108_s19 }
   0xc   : > { %p1546_p8 = pnand %p1176_p5, %p97_p7  ;;  %s110_s22 = sshll.u32 %s1483_s21, 4  ;;  %s111_s22 = int_to_ptr.vmem [resolvable:$true] %s110_s22 }
   0xd   : > { %s1556_s23 = sadd.s32 1, %s1481_s12   ;;  %s1484_s24 = smov 128  }
   0xe   : > { %p1290_p9 = pneg %p1546_p8  ;;  %s1485_s25 = smov 8  }
   0xf   : > { %s23_s26 = ssub.s32 %s1481_s12, %s1556_s23  ;;  %s26_s27 = sadd.s32 1, %s1477_s11 }
  0x10   : > { %p1291_p10 = pnand %p1290_p9, %p40_p1  ;;  %p24_p12 = scmp.eq.s32.totalorder %s23_s26, 0 }
  0x11   : > { %p33_p13 = scmp.ne.s32.totalorder %s1477_s11, %s1473_s10  ;;  %p34_p0 = scmp.eq.s32.totalorder %s1481_s12, 0 }
  0x12   : > { %1293 = dma.hbm_to_vmem [thread:$0]  (!%p1291_p10), %s109_s19, 1664, %s111_s22, [#allocation6], %s1484_s24, %s1484_s24, %s1485_s25  }
  0x13   : > { %s1568_s28 = scalar_select %p24_p12, %s1477_s11, %s26_s27  }
  0x14   : > { %p1572_p3 = por %p84_p2, %p33_p13  ;;  %p1303_p5 = scmp.lt.s32.totalorder %s1481_s12, 2 }
  0x15   : > { %s124_s30 = sand.u32 1, %s1477_s11   ;;  %s1281_s3 = sshll.u32 %s1481_s12, 6 }
  0x16   : > { %p35_p7 = por %p34_p0, %p33_p13  ;;  %s1179_s4 = sshll.u32 %s124_s30, 6 }
  0x17   : > { %s134_s7 = scalar_lea.hbm %s1917_s0, %s1281_s3  ;;  %s128_s14 = scalar_lea.vmem [#allocation2], %s1179_s4 }
  0x18   : > { %s135_s8 = sshll.u32 %s134_s7, 4  ;;  %s137_s17 = sshll.u32 %s128_s14, 4  ;;  %s136_s8 = int_to_ptr.hbm [resolvable:$true] %s135_s8  ;;  %s138_s17 = int_to_ptr.vmem [resolvable:$true] %s137_s17 }
  0x19   : > { %p1582_p9 = pnand %p1303_p5, %p35_p7  ;;  %s125_s19 = scalar_lea.sflag [#allocation3], %s124_s30 }
  0x1a   : > { %s1381_s21 = sshra.s32 %s136_s8, 4  ;;  %s1388_s3 = scalar_lea.hbm %s1917_s0, 128  ;;  %s1382_s21 = int_to_ptr.hbm [resolvable:$true] %s1381_s21 }
  0x1b   : > { %s1383_s22 = scalar_lea.hbm %s1382_s21, 64  ;;  %p1385_p10 = pneg %p1582_p9 }
  0x1c   : > { %p1384_p2 = scmp.ne.s32.totalorder %s1382_s21, %s1383_s22  ;;  %p1389_p0 = scmp.lt.s32.totalorder %s1382_s21, %s1917_s0 }
  0x1d   : > { %p1390_p5 = scmp.lt.s32.totalorder %s1388_s3, %s1383_s22 }
  0x1e   : > { %p1386_p12 = pnand %p1385_p10, %p1384_p2 }
  0x1f   : > { %p1391_p7 = por %p1390_p5, %p1389_p0 }
  0x20   : > { %p1387_p13 = pneg %p1386_p12 }
  0x22   : > { %p1392_p11 = pnand %p1391_p7, %p1387_p13 }
  0x24   : > { %1395 = shalt.err (!%p1392_p11)
}
  0x25   : > { %1297 = dma.hbm_to_vmem [thread:$0]  (!%p1582_p9), %s136_s8, 1024, %s138_s17, %s125_s19, %s1484_s24, %s1484_s24, %s1485_s25  }
  0x26   : > { %149 = sbr.rel (%p1546_p8) target bundleno = 989 (0x3dd), region = 28  ;;  %s1602_s30 = sand.u32 (!%p1546_p8), 1, %s1473_s10  }
  0x27   : > { %s1184_s6 = sshll.u32 (!%p1546_p8), %s1602_s30, 6  ;;  %s152_s7 = scalar_lea.sflag (!%p1546_p8), [#allocation3], %s1602_s30 }
  0x28   : > { %s1606_s14 = scalar_lea.vmem (!%p1546_p8), [#allocation2], %s1184_s6 }
  0x2b   : > { %1456 = dma.done.wait (%p1533_p4), %s152_s7, 1024  }
  0x2c   : > { %1458 = vsyncadd (%p1533_p4), %s152_s7, 4294966272 }
  0x2d   : > { %1460 = dma.done.wait (%p40_p1), [#allocation6], 1664  }
  0x2e   : > { %1462 = vsyncadd (%p40_p1), [#allocation6], 4294965632  ;;  %v1486_v0 = vmov 4   ;;  %v187_v1 = vld [vmem:[%s1606_s14] sm:$0xff]  ;;  %v1620_v3 = vld [vmem:[#allocation5 + $0x10] sm:$0xff]  ;;  %vm221_vm0 = vcmask 1043456  }
  0x2f   : > { %1344 = vset.pattern.permute.xlu0 %v1486_v0  ;;  %1345 = vset.pattern.permute.xlu1 %v1486_v0  ;;  %v1617_v2 = vld [vmem:[#allocation5] sm:$0xff]  ;;  %209 = vst [vmem:[#allocation1] ss:$2 sm:$0xff] %v187_v1  ;;  %v1197_v4 = vld [vmem:[%s1606_s14 + $0x8] sm:$0xff]  ;;  %vm212_vm1 = vcmask 31744   ;;  %v1632_v8 = vld [vmem:[#allocation5 + $0x18] sm:$0xff] }
  0x30   : > { %190 = vperm.xlu0 %1344, %v1617_v2   ;;  %200 = vperm.xlu1 %1345, %v1620_v3   ;;  %v1630_v7 = vld [vmem:[#allocation5 + $0x8] sm:$0xff]  ;;  %v1208_v9 = vld [vmem:[%s1606_s14 + $0x10] sm:$0xff]  ;;  %v1219_v12 = vld [vmem:[%s1606_s14 + $0x18] sm:$0xff]  ;;  %vm920_vm2 = vcmask 7168   ;;  %vm925_vm3 = vcmask 15360   ;;  %vm930_vm4 = vcmask 23552  }
  0x31   : > { %v1230_v15 = vld [vmem:[%s1606_s14 + $0x20] sm:$0xff]  ;;  %v1241_v18 = vld [vmem:[%s1606_s14 + $0x28] sm:$0xff]  ;;  %v1252_v21 = vld [vmem:[%s1606_s14 + $0x30] sm:$0xff]  ;;  %vm939_vm5 = vcmask 39936   ;;  %vm944_vm6 = vcmask 48128   ;;  %vm949_vm7 = vcmask 56320  }
  0x32   : > { %v1263_v26 = vld [vmem:[%s1606_s14 + $0x38] sm:$0xff]  ;;  %vm998_vm8 = vcmask 261120   ;;  %s1487_s15 = smov 16   ;;  %s1186_s20 = sshll.u32 %s1602_s30, 3  ;;  %vm1074_vm12 = vcmask 130048   ;;  %vm1076_vm13 = vcmask 392192  }
  0x33   : > { %s1277_s24 = sshll.u32 %s1524_s13, 3  ;;  %s181_s18 = scalar_lea.vmem [#allocation7], %s1186_s20 }
  0x34   : > { %s1090_s17 = scalar_lea.hbm %s1919_s2, %s1277_s24  ;;  %s1092_s19 = sshll.u32 %s181_s18, 4  ;;  %s1093_s19 = int_to_ptr.vmem [resolvable:$true] %s1092_s19 }
  0x35   : > { %s1094_s21 = sshll.u32 %s1090_s17, 4  ;;  %s1080_s22 = scalar_lea.sflag [#allocation4], %s1602_s30  ;;  %s1095_s21 = int_to_ptr.hbm [resolvable:$true] %s1094_s21 }
  0x36   : > { %v210_v5 = vld.sshfl [vmem:[#allocation1] sm:$0xff pattern:$0x75316420]  ;;  %v211_v6 = vld.sshfl [vmem:[#allocation1 + $0x8] sm:$0xff pattern:$0x75316420] }
  0x37   : > { %1187 = vmatpush.msk.msra.mxu0 %vm221_vm0, %v210_v5  ;;  %1192 = vmatpush.msk.msra.mxu1 %vm221_vm0, %v211_v6  ;;  %307 = vst [vmem:[#allocation1] ss:$2 sm:$0xff] %v1197_v4  ;;  %s1425_s26 = sshra.s32 %s1095_s21, 4  ;;  %s1431_s4 = scalar_lea.hbm %s1919_s2, 16  ;;  %s1426_s26 = int_to_ptr.hbm [resolvable:$true] %s1425_s26 }
  0x38   : > { %1188 = vmatmul.msk.f32.vlgmr.msra.gmra.mxu0 %vm212_vm1, %v1617_v2  ;;  %1193 = vmatmul.msk.f32.vlgmr.msra.gmra.mxu1 %vm212_vm1, %v1617_v2  ;;  %s1427_s13 = scalar_lea.hbm %s1426_s26, 8  ;;  %p1432_p11 = scmp.lt.s32.totalorder %s1426_s26, %s1919_s2 }
  0x39   : > { %195 = vperm.xlu0 %1344, %v1630_v7   ;;  %205 = vperm.xlu1 %1345, %v1632_v8   ;;  %p1428_p1 = scmp.ne.s32.totalorder %s1426_s26, %s1427_s13  ;;  %p1433_p9 = scmp.lt.s32.totalorder %s1431_s4, %s1427_s13 }
  0x3b   : > { %p1429_p4 = pnand %p1428_p1, %p1572_p3  ;;  %p1434_p2 = por %p1433_p9, %p1432_p11 }
  0x3d   : > { %p1430_p8 = pneg %p1429_p4 }
  0x3e   : > { %v308_v10 = vld.sshfl [vmem:[#allocation1] sm:$0xff pattern:$0x75316420]  ;;  %v309_v11 = vld.sshfl [vmem:[#allocation1 + $0x8] sm:$0xff pattern:$0x75316420] }
  0x3f   : > { %1198 = vmatpush.msk.msra.mxu2 %vm221_vm0, %v308_v10  ;;  %1203 = vmatpush.msk.msra.mxu3 %vm221_vm0, %v309_v11  ;;  %395 = vst [vmem:[#allocation1] ss:$2 sm:$0xff] %v1208_v9  ;;  %p1435_p10 = pnand %p1434_p2, %p1430_p8 }
  0x40   : > { %1189 = vmatmul.msk.f32.gmra.mxu0 %vm212_vm1, %v1630_v7  ;;  %1194 = vmatmul.msk.f32.gmra.mxu1 %vm212_vm1, %v1630_v7 }
  0x41   : > { %1199 = vmatmul.msk.f32.vlgmr.msra.gmra.mxu2 %vm212_vm1, %v1617_v2  ;;  %1204 = vmatmul.msk.f32.vlgmr.msra.gmra.mxu3 %vm212_vm1, %v1617_v2 }
  0x46   : > { %v396_v13 = vld.sshfl [vmem:[#allocation1] sm:$0xff pattern:$0x75316420]  ;;  %v397_v14 = vld.sshfl [vmem:[#allocation1 + $0x8] sm:$0xff pattern:$0x75316420] }
  0x47   : > { %483 = vst [vmem:[#allocation1] ss:$2 sm:$0xff] %v1219_v12  ;;  %1209 = vmatpush.msk.msrb.mxu0 %vm221_vm0, %v396_v13  ;;  %1214 = vmatpush.msk.msrb.mxu1 %vm221_vm0, %v397_v14 }
  0x48   : > { %1190 = vmatmul.msk.f32.gmra.mxu0 %vm212_vm1, %v1620_v3  ;;  %1195 = vmatmul.msk.f32.gmra.mxu1 %vm212_vm1, %v1620_v3 }
  0x49   : > { %1200 = vmatmul.msk.f32.gmra.mxu2 %vm212_vm1, %v1630_v7  ;;  %1205 = vmatmul.msk.f32.gmra.mxu3 %vm212_vm1, %v1630_v7 }
  0x4e   : > { %v484_v16 = vld.sshfl [vmem:[#allocation1] sm:$0xff pattern:$0x75316420]  ;;  %v485_v17 = vld.sshfl [vmem:[#allocation1 + $0x8] sm:$0xff pattern:$0x75316420] }
  0x4f   : > { %1220 = vmatpush.msk.msrb.mxu2 %vm221_vm0, %v484_v16  ;;  %1225 = vmatpush.msk.msrb.mxu3 %vm221_vm0, %v485_v17  ;;  %571 = vst [vmem:[#allocation1] ss:$2 sm:$0xff] %v1230_v15 }
  0x50   : > { %1191 = vmatmul.msk.f32.gmra.mxu0 %vm212_vm1, %v1632_v8  ;;  %1196 = vmatmul.msk.f32.gmra.mxu1 %vm212_vm1, %v1632_v8 }
  0x51   : > { %1201 = vmatmul.msk.f32.gmra.mxu2 %vm212_vm1, %v1620_v3  ;;  %1206 = vmatmul.msk.f32.gmra.mxu3 %vm212_vm1, %v1620_v3 }
  0x56   : > { %v572_v19 = vld.sshfl [vmem:[#allocation1] sm:$0xff pattern:$0x75316420]  ;;  %v573_v20 = vld.sshfl [vmem:[#allocation1 + $0x8] sm:$0xff pattern:$0x75316420] }
  0x57   : > { %659 = vst [vmem:[#allocation1] ss:$2 sm:$0xff] %v1241_v18  ;;  %1231 = vmatpush.msk.msra.mxu0 %vm221_vm0, %v572_v19  ;;  %1236 = vmatpush.msk.msra.mxu1 %vm221_vm0, %v573_v20 }
  0x58   : > { %1210 = vmatmul.msk.f32.vlgmr.msrb.gmra.mxu0 %vm212_vm1, %v1617_v2  ;;  %1215 = vmatmul.msk.f32.vlgmr.msrb.gmra.mxu1 %vm212_vm1, %v1617_v2 }
  0x59   : > { %1202 = vmatmul.msk.f32.gmra.mxu2 %vm212_vm1, %v1632_v8  ;;  %1207 = vmatmul.msk.f32.gmra.mxu3 %vm212_vm1, %v1632_v8 }
  0x5e   : > { %v660_v22 = vld.sshfl [vmem:[#allocation1] sm:$0xff pattern:$0x75316420]  ;;  %v661_v23 = vld.sshfl [vmem:[#allocation1 + $0x8] sm:$0xff pattern:$0x75316420] }
  0x5f   : > { %1242 = vmatpush.msk.msra.mxu2 %vm221_vm0, %v660_v22  ;;  %1247 = vmatpush.msk.msra.mxu3 %vm221_vm0, %v661_v23  ;;  %747 = vst [vmem:[#allocation1] ss:$2 sm:$0xff] %v1252_v21 }
  0x60   : > { %1211 = vmatmul.msk.f32.gmra.mxu0 %vm212_vm1, %v1630_v7  ;;  %1216 = vmatmul.msk.f32.gmra.mxu1 %vm212_vm1, %v1630_v7 }
  0x61   : > { %1221 = vmatmul.msk.f32.vlgmr.msrb.gmra.mxu2 %vm212_vm1, %v1617_v2  ;;  %1226 = vmatmul.msk.f32.vlgmr.msrb.gmra.mxu3 %vm212_vm1, %v1617_v2 }
  0x66   : > { %v748_v24 = vld.sshfl [vmem:[#allocation1] sm:$0xff pattern:$0x75316420]  ;;  %v749_v25 = vld.sshfl [vmem:[#allocation1 + $0x8] sm:$0xff pattern:$0x75316420] }
  0x67   : > { %1253 = vmatpush.msk.msrb.mxu0 %vm221_vm0, %v748_v24  ;;  %1258 = vmatpush.msk.msrb.mxu1 %vm221_vm0, %v749_v25  ;;  %835 = vst [vmem:[#allocation1] ss:$2 sm:$0xff] %v1263_v26 }
  0x68   : > { %1212 = vmatmul.msk.f32.gmra.mxu0 %vm212_vm1, %v1620_v3  ;;  %1217 = vmatmul.msk.f32.gmra.mxu1 %vm212_vm1, %v1620_v3 }
  0x69   : > { %1222 = vmatmul.msk.f32.gmra.mxu2 %vm212_vm1, %v1630_v7  ;;  %1227 = vmatmul.msk.f32.gmra.mxu3 %vm212_vm1, %v1630_v7 }
  0x6e   : > { %v836_v27 = vld.sshfl [vmem:[#allocation1] sm:$0xff pattern:$0x75316420]  ;;  %v837_v28 = vld.sshfl [vmem:[#allocation1 + $0x8] sm:$0xff pattern:$0x75316420] }
  0x6f   : > { %1264 = vmatpush.msk.msrb.mxu2 %vm221_vm0, %v836_v27  ;;  %1269 = vmatpush.msk.msrb.mxu3 %vm221_vm0, %v837_v28 }
  0x70   : > { %1213 = vmatmul.msk.f32.gmra.mxu0 %vm212_vm1, %v1632_v8  ;;  %1218 = vmatmul.msk.f32.gmra.mxu1 %vm212_vm1, %v1632_v8 }
  0x71   : > { %1223 = vmatmul.msk.f32.gmra.mxu2 %vm212_vm1, %v1620_v3  ;;  %1228 = vmatmul.msk.f32.gmra.mxu3 %vm212_vm1, %v1620_v3 }
  0x78   : > { %1232 = vmatmul.msk.f32.vlgmr.msra.gmra.mxu0 %vm212_vm1, %v1617_v2  ;;  %1237 = vmatmul.msk.f32.vlgmr.msra.gmra.mxu1 %vm212_vm1, %v1617_v2 }
  0x79   : > { %1224 = vmatmul.msk.f32.gmra.mxu2 %vm212_vm1, %v1632_v8  ;;  %1229 = vmatmul.msk.f32.gmra.mxu3 %vm212_vm1, %v1632_v8 }
  0x80   : > { %1233 = vmatmul.msk.f32.gmra.mxu0 %vm212_vm1, %v1630_v7  ;;  %1238 = vmatmul.msk.f32.gmra.mxu1 %vm212_vm1, %v1630_v7 }
  0x81   : > { %1243 = vmatmul.msk.f32.vlgmr.msra.gmra.mxu2 %vm212_vm1, %v1617_v2  ;;  %1248 = vmatmul.msk.f32.vlgmr.msra.gmra.mxu3 %vm212_vm1, %v1617_v2 }
  0x88   : > { %1234 = vmatmul.msk.f32.gmra.mxu0 %vm212_vm1, %v1620_v3  ;;  %1239 = vmatmul.msk.f32.gmra.mxu1 %vm212_vm1, %v1620_v3 }
  0x89   : > { %1244 = vmatmul.msk.f32.gmra.mxu2 %vm212_vm1, %v1630_v7  ;;  %1249 = vmatmul.msk.f32.gmra.mxu3 %vm212_vm1, %v1630_v7 }
  0x90   : > { %1235 = vmatmul.msk.f32.gmra.mxu0 %vm212_vm1, %v1632_v8  ;;  %1240 = vmatmul.msk.f32.gmra.mxu1 %vm212_vm1, %v1632_v8 }
  0x91   : > { %1245 = vmatmul.msk.f32.gmra.mxu2 %vm212_vm1, %v1620_v3  ;;  %1250 = vmatmul.msk.f32.gmra.mxu3 %vm212_vm1, %v1620_v3 }
  0x98   : > { %1254 = vmatmul.msk.f32.vlgmr.msrb.gmra.mxu0 %vm212_vm1, %v1617_v2  ;;  %1259 = vmatmul.msk.f32.vlgmr.msrb.gmra.mxu1 %vm212_vm1, %v1617_v2 }
  0x99   : > { %1246 = vmatmul.msk.f32.gmra.mxu2 %vm212_vm1, %v1632_v8  ;;  %1251 = vmatmul.msk.f32.gmra.mxu3 %vm212_vm1, %v1632_v8 }
  0xa0   : > { %1255 = vmatmul.msk.f32.gmra.mxu0 %vm212_vm1, %v1630_v7  ;;  %1260 = vmatmul.msk.f32.gmra.mxu1 %vm212_vm1, %v1630_v7 }
  0xa1   : > { %1265 = vmatmul.msk.f32.vlgmr.msrb.gmra.mxu2 %vm212_vm1, %v1617_v2  ;;  %1270 = vmatmul.msk.f32.vlgmr.msrb.gmra.mxu3 %vm212_vm1, %v1617_v2 }
  0xa2   : > { %v1776_v29 = vpop.permute.xlu0 %190  ;;  %v1788_v44 = vpop.permute.xlu1 %200 }
  0xa8   : > { %1256 = vmatmul.msk.f32.gmra.mxu0 %vm212_vm1, %v1620_v3  ;;  %1261 = vmatmul.msk.f32.gmra.mxu1 %vm212_vm1, %v1620_v3 }
  0xa9   : > { %1266 = vmatmul.msk.f32.gmra.mxu2 %vm212_vm1, %v1630_v7  ;;  %1271 = vmatmul.msk.f32.gmra.mxu3 %vm212_vm1, %v1630_v7 }
  0xab   : > { %v1784_v37 = vpop.permute.xlu0 %195  ;;  %v1794_v60 = vpop.permute.xlu1 %205 }
  0xb0   : > { %1257 = vmatmul.msk.f32.gmra.mxu0 %vm212_vm1, %v1632_v8  ;;  %1262 = vmatmul.msk.f32.gmra.mxu1 %vm212_vm1, %v1632_v8 }
  0xb1   : > { %1267 = vmatmul.msk.f32.gmra.mxu2 %vm212_vm1, %v1620_v3  ;;  %1272 = vmatmul.msk.f32.gmra.mxu3 %vm212_vm1, %v1620_v3 }
  0xb5   : > { %v243_v30 = vpop.f32.mrf.mxu0  ;;  %v272_v31 = vpop.f32.mrf.mxu1 }
  0xb6   : > { %v244_v32 = vadd.f32 %v243_v30, %v1776_v29  ;;  %v273_v33 = vadd.f32 %v272_v31, %v1776_v29 }
  0xb8   : > { %v284_v34 = vmax.f32 %v244_v32, 0.0  ;;  %v285_v35 = vmax.f32 %v273_v33, 0.0 }
  0xb9   : > { %1268 = vmatmul.msk.f32.gmra.mxu2 %vm212_vm1, %v1632_v8  ;;  %1273 = vmatmul.msk.f32.gmra.mxu3 %vm212_vm1, %v1632_v8 }
  0xba   : > { %v292_v36 = vadd.f32 %v285_v35, %v284_v34 }
  0xbc   : > { %293 = vadd.xlane.f32.xlu2 %v292_v36 }
  0xbd   : > { %v246_v38 = vpop.f32.mrf.mxu0  ;;  %v275_v39 = vpop.f32.mrf.mxu1 }
  0xbe   : > { %v247_v40 = vadd.f32 %v246_v38, %v1784_v37  ;;  %v276_v41 = vadd.f32 %v275_v39, %v1784_v37 }
  0xc0   : > { %v286_v42 = vmax.f32 %v247_v40, 0.0  ;;  %v287_v43 = vmax.f32 %v276_v41, 0.0 }
  0xc2   : > { %v295_v45 = vadd.f32 %v287_v43, %v286_v42 }
  0xc4   : > { %v331_v46 = vpop.f32.mrf.mxu2  ;;  %v360_v47 = vpop.f32.mrf.mxu3  ;;  %296 = vadd.xlane.f32.xlu2 %v295_v45 }
  0xc5   : > { %v332_v48 = vadd.f32 %v331_v46, %v1776_v29  ;;  %v361_v49 = vadd.f32 %v360_v47, %v1776_v29  ;;  %v249_v50 = vpop.f32.mrf.mxu0  ;;  %v278_v51 = vpop.f32.mrf.mxu1 }
  0xc6   : > { %v250_v52 = vadd.f32 %v249_v50, %v1788_v44  ;;  %v279_v53 = vadd.f32 %v278_v51, %v1788_v44 }
  0xc7   : > { %v372_v54 = vmax.f32 %v332_v48, 0.0  ;;  %v373_v55 = vmax.f32 %v361_v49, 0.0 }
  0xc8   : > { %v288_v56 = vmax.f32 %v250_v52, 0.0  ;;  %v289_v57 = vmax.f32 %v279_v53, 0.0 }
  0xc9   : > { %v380_v58 = vadd.f32 %v373_v55, %v372_v54 }
  0xca   : > { %v298_v59 = vadd.f32 %v289_v57, %v288_v56 }
  0xcc   : > { %v334_v61 = vpop.f32.mrf.mxu2  ;;  %v363_v62 = vpop.f32.mrf.mxu3  ;;  %381 = vadd.xlane.f32.xlu2 %v380_v58  ;;  %299 = vadd.xlane.f32.xlu1 %v298_v59 }
  0xcd   : > { %v335_v63 = vadd.f32 %v334_v61, %v1784_v37  ;;  %v364_v0 = vadd.f32 %v363_v62, %v1784_v37  ;;  %v252_v1 = vpop.f32.mrf.mxu0  ;;  %v281_v2 = vpop.f32.mrf.mxu1 }
  0xce   : > { %v253_v3 = vadd.f32 %v252_v1, %v1794_v60  ;;  %v282_v4 = vadd.f32 %v281_v2, %v1794_v60 }
  0xcf   : > { %v374_v5 = vmax.f32 %v335_v63, 0.0  ;;  %v375_v6 = vmax.f32 %v364_v0, 0.0 }
  0xd0   : > { %v290_v7 = vmax.f32 %v253_v3, 0.0  ;;  %v291_v8 = vmax.f32 %v282_v4, 0.0 }
  0xd1   : > { %v383_v10 = vadd.f32 %v375_v6, %v374_v5 }
  0xd2   : > { %v301_v9 = vadd.f32 %v291_v8, %v290_v7 }
  0xd4   : > { %v337_v11 = vpop.f32.mrf.mxu2  ;;  %v366_v12 = vpop.f32.mrf.mxu3  ;;  %302 = vadd.xlane.f32.xlu0 %v301_v9  ;;  %384 = vadd.xlane.f32.xlu2 %v383_v10 }
  0xd5   : > { %v338_v13 = vadd.f32 %v337_v11, %v1788_v44  ;;  %v367_v14 = vadd.f32 %v366_v12, %v1788_v44  ;;  %v419_v15 = vpop.f32.mrf.mxu0  ;;  %v448_v16 = vpop.f32.mrf.mxu1 }
  0xd6   : > { %v420_v17 = vadd.f32 %v419_v15, %v1776_v29  ;;  %v449_v18 = vadd.f32 %v448_v16, %v1776_v29 }
  0xd7   : > { %v376_v19 = vmax.f32 %v338_v13, 0.0  ;;  %v377_v20 = vmax.f32 %v367_v14, 0.0 }
  0xd8   : > { %v460_v21 = vmax.f32 %v420_v17, 0.0  ;;  %v461_v22 = vmax.f32 %v449_v18, 0.0 }
  0xd9   : > { %v386_v24 = vadd.f32 %v377_v20, %v376_v19 }
  0xda   : > { %v468_v23 = vadd.f32 %v461_v22, %v460_v21 }
  0xdc   : > { %v340_v25 = vpop.f32.mrf.mxu2  ;;  %v369_v26 = vpop.f32.mrf.mxu3  ;;  %469 = vadd.xlane.f32.xlu0 %v468_v23  ;;  %387 = vadd.xlane.f32.xlu2 %v386_v24 }
  0xdd   : > { %v341_v27 = vadd.f32 %v340_v25, %v1794_v60  ;;  %v370_v28 = vadd.f32 %v369_v26, %v1794_v60  ;;  %v422_v30 = vpop.f32.mrf.mxu0  ;;  %v451_v31 = vpop.f32.mrf.mxu1 }
  0xde   : > { %v423_v32 = vadd.f32 %v422_v30, %v1784_v37  ;;  %v452_v33 = vadd.f32 %v451_v31, %v1784_v37 }
  0xdf   : > { %v378_v34 = vmax.f32 %v341_v27, 0.0  ;;  %v379_v35 = vmax.f32 %v370_v28, 0.0 }
  0xe0   : > { %v462_v36 = vmax.f32 %v423_v32, 0.0  ;;  %v463_v38 = vmax.f32 %v452_v33, 0.0 }
  0xe1   : > { %v389_v39 = vadd.f32 %v379_v35, %v378_v34 }
  0xe2   : > { %v471_v40 = vadd.f32 %v463_v38, %v462_v36 }
  0xe3   : > { %390 = vadd.xlane.f32.xlu1 %v389_v39 }
  0xe4   : > { %v507_v41 = vpop.f32.mrf.mxu2  ;;  %v536_v42 = vpop.f32.mrf.mxu3  ;;  %472 = vadd.xlane.f32.xlu2 %v471_v40 }
  0xe5   : > { %v508_v43 = vadd.f32 %v507_v41, %v1776_v29  ;;  %v537_v45 = vadd.f32 %v536_v42, %v1776_v29  ;;  %v425_v46 = vpop.f32.mrf.mxu0  ;;  %v454_v47 = vpop.f32.mrf.mxu1 }
  0xe6   : > { %v426_v48 = vadd.f32 %v425_v46, %v1788_v44  ;;  %v455_v49 = vadd.f32 %v454_v47, %v1788_v44 }
  0xe7   : > { %v548_v50 = vmax.f32 %v508_v43, 0.0  ;;  %v549_v51 = vmax.f32 %v537_v45, 0.0 }
  0xe8   : > { %v464_v52 = vmax.f32 %v426_v48, 0.0  ;;  %v465_v53 = vmax.f32 %v455_v49, 0.0 }
  0xe9   : > { %v556_v54 = vadd.f32 %v549_v51, %v548_v50 }
  0xea   : > { %v474_v55 = vadd.f32 %v465_v53, %v464_v52 }
  0xeb   : > { %557 = vadd.xlane.f32.xlu1 %v556_v54 }
  0xec   : > { %v510_v56 = vpop.f32.mrf.mxu2  ;;  %v539_v57 = vpop.f32.mrf.mxu3  ;;  %475 = vadd.xlane.f32.xlu2 %v474_v55 }
  0xed   : > { %v511_v58 = vadd.f32 %v510_v56, %v1784_v37  ;;  %v540_v59 = vadd.f32 %v539_v57, %v1784_v37  ;;  %v428_v61 = vpop.f32.mrf.mxu0  ;;  %v457_v62 = vpop.f32.mrf.mxu1 }
  0xee   : > { %v429_v63 = vadd.f32 %v428_v61, %v1794_v60  ;;  %v458_v0 = vadd.f32 %v457_v62, %v1794_v60 }
  0xef   : > { %v550_v1 = vmax.f32 %v511_v58, 0.0  ;;  %v551_v2 = vmax.f32 %v540_v59, 0.0 }
  0xf0   : > { %v466_v3 = vmax.f32 %v429_v63, 0.0  ;;  %v467_v4 = vmax.f32 %v458_v0, 0.0 }
  0xf1   : > { %v559_v6 = vadd.f32 %v551_v2, %v550_v1 }
  0xf2   : > { %v477_v5 = vadd.f32 %v467_v4, %v466_v3 }
  0xf4   : > { %v513_v7 = vpop.f32.mrf.mxu2  ;;  %v542_v8 = vpop.f32.mrf.mxu3  ;;  %478 = vadd.xlane.f32.xlu1 %v477_v5  ;;  %560 = vadd.xlane.f32.xlu2 %v559_v6 }
  0xf5   : > { %v514_v9 = vadd.f32 %v513_v7, %v1788_v44  ;;  %v543_v10 = vadd.f32 %v542_v8, %v1788_v44  ;;  %v595_v11 = vpop.f32.mrf.mxu0  ;;  %v624_v12 = vpop.f32.mrf.mxu1 }
  0xf6   : > { %v596_v13 = vadd.f32 %v595_v11, %v1776_v29  ;;  %v625_v14 = vadd.f32 %v624_v12, %v1776_v29 }
  0xf7   : > { %v552_v15 = vmax.f32 %v514_v9, 0.0  ;;  %v553_v16 = vmax.f32 %v543_v10, 0.0 }
  0xf8   : > { %v636_v17 = vmax.f32 %v596_v13, 0.0  ;;  %v637_v18 = vmax.f32 %v625_v14, 0.0 }
  0xf9   : > { %v562_v19 = vadd.f32 %v553_v16, %v552_v15 }
  0xfa   : > { %v644_v20 = vadd.f32 %v637_v18, %v636_v17 }
  0xfc   : > { %v516_v21 = vpop.f32.mrf.mxu2  ;;  %v545_v22 = vpop.f32.mrf.mxu3  ;;  %563 = vadd.xlane.f32.xlu1 %v562_v19  ;;  %645 = vadd.xlane.f32.xlu2 %v644_v20 }
  0xfd   : > { %v517_v23 = vadd.f32 %v516_v21, %v1794_v60  ;;  %v546_v24 = vadd.f32 %v545_v22, %v1794_v60  ;;  %v598_v25 = vpop.f32.mrf.mxu0  ;;  %v627_v26 = vpop.f32.mrf.mxu1 }
  0xfe   : > { %v599_v30 = vadd.f32 %v598_v25, %v1784_v37  ;;  %v628_v31 = vadd.f32 %v627_v26, %v1784_v37 }
  0xff   : > { %v554_v27 = vmax.f32 %v517_v23, 0.0  ;;  %v555_v28 = vmax.f32 %v546_v24, 0.0 }
 0x100   : > { %v638_v35 = vmax.f32 %v599_v30, 0.0  ;;  %v639_v36 = vmax.f32 %v628_v31, 0.0 }
 0x101   : > { %v565_v32 = vadd.f32 %v555_v28, %v554_v27 }
 0x102   : > { %v647_v47 = vadd.f32 %v639_v36, %v638_v35 }
 0x103   : > { %566 = vadd.xlane.f32.xlu0 %v565_v32 }
 0x104   : > { %v683_v33 = vpop.f32.mrf.mxu2  ;;  %v712_v34 = vpop.f32.mrf.mxu3 }
 0x105   : > { %v684_v38 = vadd.f32 %v683_v33, %v1776_v29  ;;  %v713_v39 = vadd.f32 %v712_v34, %v1776_v29  ;;  %v601_v40 = vpop.f32.mrf.mxu0  ;;  %v630_v41 = vpop.f32.mrf.mxu1 }
 0x106   : > { %v602_v45 = vadd.f32 %v601_v40, %v1788_v44  ;;  %v631_v46 = vadd.f32 %v630_v41, %v1788_v44 }
 0x107   : > { %v724_v42 = vmax.f32 %v684_v38, 0.0  ;;  %v725_v43 = vmax.f32 %v713_v39, 0.0 }
 0x108   : > { %v640_v51 = vmax.f32 %v602_v45, 0.0  ;;  %v641_v52 = vmax.f32 %v631_v46, 0.0 }
 0x109   : > { %v732_v48 = vadd.f32 %v725_v43, %v724_v42 }
 0x10a   : > { %v650_v63 = vadd.f32 %v641_v52, %v640_v51 }
 0x10b   : > { %648 = vadd.xlane.f32.xlu0 %v647_v47  ;;  %733 = vadd.xlane.f32.xlu2 %v732_v48 }
 0x10c   : > { %v686_v49 = vpop.f32.mrf.mxu2  ;;  %v715_v50 = vpop.f32.mrf.mxu3 }
 0x10d   : > { %v687_v53 = vadd.f32 %v686_v49, %v1784_v37  ;;  %v716_v54 = vadd.f32 %v715_v50, %v1784_v37  ;;  %v604_v55 = vpop.f32.mrf.mxu0  ;;  %v633_v56 = vpop.f32.mrf.mxu1 }
 0x10e   : > { %v605_v59 = vadd.f32 %v604_v55, %v1794_v60  ;;  %v634_v61 = vadd.f32 %v633_v56, %v1794_v60 }
 0x10f   : > { %v726_v57 = vmax.f32 %v687_v53, 0.0  ;;  %v727_v58 = vmax.f32 %v716_v54, 0.0 }
 0x110   : > { %v642_v2 = vmax.f32 %v605_v59, 0.0  ;;  %v643_v3 = vmax.f32 %v634_v61, 0.0 }
 0x111   : > { %v735_v62 = vadd.f32 %v727_v58, %v726_v57 }
 0x112   : > { %v653_v12 = vadd.f32 %v643_v3, %v642_v2 }
 0x113   : > { %736 = vadd.xlane.f32.xlu0 %v735_v62  ;;  %651 = vadd.xlane.f32.xlu2 %v650_v63 }
 0x114   : > { %v689_v0 = vpop.f32.mrf.mxu2  ;;  %v718_v1 = vpop.f32.mrf.mxu3 }
 0x115   : > { %v771_v4 = vpop.f32.mrf.mxu0  ;;  %v800_v5 = vpop.f32.mrf.mxu1  ;;  %v690_v10 = vadd.f32 %v689_v0, %v1788_v44  ;;  %v719_v11 = vadd.f32 %v718_v1, %v1788_v44 }
 0x116   : > { %v772_v6 = vadd.f32 %v771_v4, %v1776_v29  ;;  %v801_v7 = vadd.f32 %v800_v5, %v1776_v29 }
 0x117   : > { %v728_v16 = vmax.f32 %v690_v10, 0.0  ;;  %v729_v17 = vmax.f32 %v719_v11, 0.0 }
 0x118   : > { %v812_v8 = vmax.f32 %v772_v6, 0.0  ;;  %v813_v9 = vmax.f32 %v801_v7, 0.0 }
 0x119   : > { %v738_v27 = vadd.f32 %v729_v17, %v728_v16 }
 0x11a   : > { %v820_v13 = vadd.f32 %v813_v9, %v812_v8 }
 0x11b   : > { %654 = vadd.xlane.f32.xlu2 %v653_v12 }
 0x11c   : > { %v692_v14 = vpop.f32.mrf.mxu2  ;;  %v721_v15 = vpop.f32.mrf.mxu3  ;;  %821 = vadd.xlane.f32.xlu0 %v820_v13 }
 0x11d   : > { %v693_v18 = vadd.f32 %v692_v14, %v1794_v60  ;;  %v722_v19 = vadd.f32 %v721_v15, %v1794_v60  ;;  %v774_v20 = vpop.f32.mrf.mxu0  ;;  %v803_v21 = vpop.f32.mrf.mxu1 }
 0x11e   : > { %v775_v24 = vadd.f32 %v774_v20, %v1784_v37  ;;  %v804_v25 = vadd.f32 %v803_v21, %v1784_v37 }
 0x11f   : > { %v730_v22 = vmax.f32 %v693_v18, 0.0  ;;  %v731_v23 = vmax.f32 %v722_v19, 0.0 }
 0x120   : > { %v814_v31 = vmax.f32 %v775_v24, 0.0  ;;  %v815_v32 = vmax.f32 %v804_v25, 0.0 }
 0x121   : > { %v741_v26 = vadd.f32 %v731_v23, %v730_v22 }
 0x122   : > { %v823_v43 = vadd.f32 %v815_v32, %v814_v31 }
 0x123   : > { %742 = vadd.xlane.f32.xlu1 %v741_v26  ;;  %739 = vadd.xlane.f32.xlu2 %v738_v27 }
 0x124   : > { %v859_v28 = vpop.f32.mrf.mxu2  ;;  %v888_v30 = vpop.f32.mrf.mxu3 }
 0x125   : > { %v860_v33 = vadd.f32 %v859_v28, %v1776_v29  ;;  %v889_v34 = vadd.f32 %v888_v30, %v1776_v29  ;;  %v777_v35 = vpop.f32.mrf.mxu0  ;;  %v806_v36 = vpop.f32.mrf.mxu1 }
 0x126   : > { %v778_v40 = vadd.f32 %v777_v35, %v1788_v44  ;;  %v807_v41 = vadd.f32 %v806_v36, %v1788_v44 }
 0x127   : > { %v900_v38 = vmax.f32 %v860_v33, 0.0  ;;  %v901_v39 = vmax.f32 %v889_v34, 0.0 }
 0x128   : > { %v816_v47 = vmax.f32 %v778_v40, 0.0  ;;  %v817_v48 = vmax.f32 %v807_v41, 0.0 }
 0x129   : > { %v908_v42 = vadd.f32 %v901_v39, %v900_v38  ;;  %v961_v38 = vld [vmem:[#allocation5 + $0x38] sm:$0xff]  ;;  %v960_v39 = vld [vmem:[#allocation5 + $0x30] sm:$0xff] }
 0x12a   : > { %v826_v61 = vadd.f32 %v817_v48, %v816_v47  ;;  %1014 = vmatpush.msra.mxu0 %v961_v38  ;;  %v958_v48 = vld [vmem:[#allocation5 + $0x20] sm:$0xff] }
 0x12b   : > { %909 = vadd.xlane.f32.xlu1 %v908_v42  ;;  %824 = vadd.xlane.f32.xlu2 %v823_v43  ;;  %v959_v43 = vld [vmem:[#allocation5 + $0x28] sm:$0xff] }
 0x12c   : > { %v862_v45 = vpop.f32.mrf.mxu2  ;;  %v891_v46 = vpop.f32.mrf.mxu3  ;;  %1015 = vmatpush.msra.mxu0 %v960_v39 }
 0x12d   : > { %v863_v49 = vadd.f32 %v862_v45, %v1784_v37  ;;  %v892_v29 = vadd.f32 %v891_v46, %v1784_v37  ;;  %v780_v50 = vpop.f32.mrf.mxu0  ;;  %v809_v51 = vpop.f32.mrf.mxu1 }
 0x12e   : > { %v781_v52 = vadd.f32 %v780_v50, %v1794_v60  ;;  %v810_v53 = vadd.f32 %v809_v51, %v1794_v60  ;;  %1016 = vmatpush.msra.mxu0 %v959_v43 }
 0x12f   : > { %v902_v54 = vmax.f32 %v863_v49, 0.0  ;;  %v903_v55 = vmax.f32 %v892_v29, 0.0  ;;  %v294_v56 = vpop.xlane.xlu2 %293 }
 0x130   : > { %v818_v57 = vmax.f32 %v781_v52, 0.0  ;;  %v819_v58 = vmax.f32 %v810_v53, 0.0  ;;  %1017 = vmatpush.msra.mxu0 %v958_v48 }
 0x131   : > { %v911_v59 = vadd.f32 %v903_v55, %v902_v54 }
 0x132   : > { %v829_v62 = vadd.f32 %v819_v58, %v818_v57 }
 0x133   : > { %912 = vadd.xlane.f32.xlu0 %v911_v59  ;;  %827 = vadd.xlane.f32.xlu1 %v826_v61 }
 0x134   : > { %v865_v63 = vpop.f32.mrf.mxu2  ;;  %v894_v0 = vpop.f32.mrf.mxu3  ;;  %830 = vadd.xlane.f32.xlu2 %v829_v62 }
 0x135   : > { %v866_v37 = vadd.f32 %v865_v63, %v1788_v44  ;;  %v895_v1 = vadd.f32 %v894_v0, %v1788_v44 }
 0x137   : > { %v904_v2 = vmax.f32 %v866_v37, 0.0  ;;  %v905_v3 = vmax.f32 %v895_v1, 0.0  ;;  %v297_v4 = vpop.xlane.xlu2 %296 }
 0x139   : > { %v914_v5 = vadd.f32 %v905_v3, %v904_v2 }
 0x13b   : > { %915 = vadd.xlane.f32.xlu0 %v914_v5 }
 0x13c   : > { %v868_v6 = vpop.f32.mrf.mxu2  ;;  %v897_v7 = vpop.f32.mrf.mxu3 }
 0x13d   : > { %v869_v8 = vadd.f32 %v868_v6, %v1794_v60  ;;  %v898_v9 = vadd.f32 %v897_v7, %v1794_v60 }
 0x13f   : > { %v906_v10 = vmax.f32 %v869_v8, 0.0  ;;  %v907_v11 = vmax.f32 %v898_v9, 0.0  ;;  %v382_v12 = vpop.xlane.xlu2 %381  ;;  %v300_v19 = vpop.xlane.xlu1 %299 }
 0x140   : > { %v921_v13 = vsel %vm920_vm2, %v294_v56, %v382_v12 }
 0x141   : > { %v917_v14 = vadd.f32 %v907_v11, %v906_v10 }
 0x143   : > { %918 = vadd.xlane.f32.xlu0 %v917_v14 }
 0x147   : > { %v385_v44 = vpop.xlane.xlu2 %384  ;;  %v303_v21 = vpop.xlane.xlu0 %302 }
 0x148   : > { %v922_v15 = vsel %vm920_vm2, %v297_v4, %v385_v44 }
 0x14f   : > { %v388_v16 = vpop.xlane.xlu2 %387  ;;  %v470_v60 = vpop.xlane.xlu0 %469 }
 0x150   : > { %v926_v36 = vsel %vm925_vm3, %v921_v13, %v470_v60  ;;  %v923_v59 = vsel %vm920_vm2, %v300_v19, %v388_v16 }
 0x156   : > { %v391_v22 = vpop.xlane.xlu1 %390 }
 0x157   : > { %v473_v17 = vpop.xlane.xlu2 %472  ;;  %v924_v5 = vsel %vm920_vm2, %v303_v21, %v391_v22 }
 0x158   : > { %v927_v50 = vsel %vm925_vm3, %v922_v15, %v473_v17  ;;  %v1346_v15 = vld [vmem:[#allocation5 + $0x60] ss:$0 sm:$0xff] }
 0x15e   : > { %v558_v24 = vpop.xlane.xlu1 %557 }
 0x15f   : > { %v476_v18 = vpop.xlane.xlu2 %475  ;;  %v931_v40 = vsel %vm930_vm4, %v926_v36, %v558_v24  ;;  %v1046_v24 = vld [vmem:[#allocation5 + $0x58] sm:$0xff] }
 0x160   : > { %v928_v61 = vsel %vm925_vm3, %v923_v59, %v476_v18  ;;  %v1347_v18 = vld [vmem:[#allocation5 + $0x61] ss:$0 sm:$0xff]  ;;  %1062 = vmatpush.msra.mxu1 %v1046_v24 }
 0x167   : > { %v561_v20 = vpop.xlane.xlu2 %560  ;;  %v479_v27 = vpop.xlane.xlu1 %478 }
 0x168   : > { %v932_v51 = vsel %vm930_vm4, %v927_v50, %v561_v20  ;;  %v929_v6 = vsel %vm925_vm3, %v924_v5, %v479_v27  ;;  %v1348_v20 = vld [vmem:[#allocation5 + $0x62] ss:$0 sm:$0xff] }
 0x169   : > { %v1043_v27 = vld [vmem:[#allocation5 + $0x40] sm:$0xff] }
 0x16f   : > { %v646_v23 = vpop.xlane.xlu2 %645  ;;  %v564_v31 = vpop.xlane.xlu1 %563 }
 0x170   : > { %v935_v42 = vsel %vm212_vm1, %v931_v40, %v646_v23  ;;  %v933_v62 = vsel %vm930_vm4, %v928_v61, %v564_v31 }
 0x176   : > { %v567_v26 = vpop.xlane.xlu0 %566 }
 0x177   : > { %v934_v7 = vsel %vm930_vm4, %v929_v6, %v567_v26  ;;  %v1044_v26 = vld [vmem:[#allocation5 + $0x48] sm:$0xff] }
 0x17e   : > { %v734_v25 = vpop.xlane.xlu2 %733  ;;  %v649_v30 = vpop.xlane.xlu0 %648 }
 0x17f   : > { %v940_v45 = vsel %vm939_vm5, %v935_v42, %v734_v25  ;;  %v936_v53 = vsel %vm212_vm1, %v932_v51, %v649_v30  ;;  %v1045_v25 = vld [vmem:[#allocation5 + $0x50] sm:$0xff] }
 0x180   : > { %1063 = vmatpush.msra.mxu1 %v1045_v25 }
 0x182   : > { %1064 = vmatpush.msra.mxu1 %v1044_v26 }
 0x184   : > { %1065 = vmatpush.msra.mxu1 %v1043_v27 }
 0x186   : > { %v652_v28 = vpop.xlane.xlu2 %651  ;;  %v737_v33 = vpop.xlane.xlu0 %736 }
 0x187   : > { %v941_v54 = vsel %vm939_vm5, %v936_v53, %v737_v33  ;;  %v937_v0 = vsel %vm212_vm1, %v933_v62, %v652_v28 }
 0x18e   : > { %v655_v32 = vpop.xlane.xlu2 %654 }
 0x18f   : > { %v822_v41 = vpop.xlane.xlu0 %821  ;;  %v938_v9 = vsel %vm212_vm1, %v934_v7, %v655_v32 }
 0x190   : > { %v945_v46 = vsel %vm944_vm6, %v940_v45, %v822_v41 }
 0x196   : > { %v743_v34 = vpop.xlane.xlu1 %742  ;;  %v740_v35 = vpop.xlane.xlu2 %739 }
 0x197   : > { %v942_v37 = vsel %vm939_vm5, %v937_v0, %v740_v35  ;;  %v943_v10 = vsel %vm939_vm5, %v938_v9, %v743_v34 }
 0x19e   : > { %v910_v47 = vpop.xlane.xlu1 %909  ;;  %v825_v52 = vpop.xlane.xlu2 %824 }
 0x19f   : > { %v950_v49 = vsel %vm949_vm7, %v945_v46, %v910_v47  ;;  %v946_v55 = vsel %vm944_vm6, %v941_v54, %v825_v52 }
 0x1a0   : > { %v954_v29 = vmul.f32 0.00390625, %v950_v49 }
 0x1a2   : > { %966 = vxpose.xlu1.b32.start [1/4] (short) (narrow) %v954_v29, 8 }
 0x1a6   : > { %v913_v56 = vpop.xlane.xlu0 %912  ;;  %v828_v63 = vpop.xlane.xlu1 %827 }
 0x1a7   : > { %v951_v57 = vsel %vm949_vm7, %v946_v55, %v913_v56  ;;  %v947_v1 = vsel %vm944_vm6, %v942_v37, %v828_v63  ;;  %v831_v8 = vpop.xlane.xlu2 %830 }
 0x1a8   : > { %v955_v58 = vmul.f32 0.00390625, %v951_v57  ;;  %v948_v11 = vsel %vm944_vm6, %v943_v10, %v831_v8 }
 0x1aa   : > { %967 = vxpose.xlu1.b32.cont [2/4] (short) (narrow) %v955_v58, 8 }
 0x1ae   : > { %v916_v2 = vpop.xlane.xlu0 %915 }
 0x1af   : > { %v952_v3 = vsel %vm949_vm7, %v947_v1, %v916_v2 }
 0x1b0   : > { %v956_v4 = vmul.f32 0.00390625, %v952_v3 }
 0x1b2   : > { %968 = vxpose.xlu1.b32.cont [3/4] (short) (narrow) %v956_v4, 8 }
 0x1b6   : > { %v919_v12 = vpop.xlane.xlu0 %918 }
 0x1b7   : > { %v953_v13 = vsel %vm949_vm7, %v948_v11, %v919_v12 }
 0x1b8   : > { %v957_v14 = vmul.f32 0.00390625, %v953_v13 }
 0x1ba   : > { %969 = vxpose.xlu1.b32.end [4/4] (short) (narrow) %v957_v14, 8 }
 0x246   : > { %v982_v44 = vpop.trf.xlu1 }
 0x247   : > { %1274 = vmatmul.msk.f32.vlgmr.msra.gmra.mxu0 %vm998_vm8, %v982_v44 }
 0x2c4   : > { %v1019_v16 = vpop.f32.mrf.mxu0 }
 0x2c5   : > { %v1020_v17 = vadd.f32 %v1346_v15, %v1019_v16 }
 0x2c7   : > { %v1022_v19 = vmax.f32 %v1020_v17, 0.0 }
 0x2c9   : > { %v1024_v21 = vmul.f32 %v1347_v18, %v1022_v19 }
 0x2cb   : > { %v1026_v22 = vadd.f32 %v1348_v20, %v1024_v21 }
 0x2cd   : > { %v1027_v23 = vmul.f32 %v1026_v22, %v1026_v22  ;;  %1071 = vrot.lane.b32.xlu0 %v1026_v22, %s1487_s15 }
 0x2cf   : > { %v1028_v60 = vsel %vm998_vm8, %v1027_v23, 0.0 }
 0x2d0   : > { %1029 = vadd.xlane.f32.xlu2 %v1028_v60 }
 0x33f   : > { %v1072_v40 = vpop.permute.xlu0 %1071 }
 0x343   : > { %v1030_v28 = vpop.xlane.xlu2 %1029 }
 0x344   : > { %v1031_v30 = vmax.f32 %v1030_v28, 1e-24 }
 0x346   : > { %1349 = vrsqrt.f32 %v1031_v30  ;;  %vm1038_vm10 = vweird.f32 %v1031_v30 }
 0x34c   : > { %v1350_v31 = vpop.eup %1349 }
 0x34d   : > { %v1033_v32 = vmul.f32 %v1350_v31, %v1031_v30  ;;  %vm1039_vm9 = vweird.f32 %v1350_v31 }
 0x34e   : > { %vm1040_vm11 = vmor %vm1038_vm10, %vm1039_vm9 }
 0x34f   : > { %v1034_v33 = vmul.f32 %v1350_v31, %v1033_v32 }
 0x351   : > { %v1035_v34 = vmul.f32 0.5, %v1034_v33 }
 0x353   : > { %v1036_v35 = vsub.f32 1.5, %v1035_v34 }
 0x355   : > { %v1037_v36 = vmul.f32 %v1350_v31, %v1036_v35 }
 0x357   : > { %v1041_v38 = vsel %vm1040_vm11, %v1350_v31, %v1037_v36 }
 0x358   : > { %v1042_v39 = vmul.f32 %v1041_v38, %v1026_v22 }
 0x35a   : > { %1275 = vmatmul.msk.f32.vlgmr.msra.gmra.mxu1 %vm998_vm8, %v1042_v39 }
 0x3d7   : > { %v1067_v41 = vpop.f32.mrf.mxu1 }
 0x3d8   : > { %v1075_v42 = vsel %vm1074_vm12, %v1067_v41, %v1072_v40 }
 0x3d9   : > { %v1077_v43 = vsel %vm1076_vm13, %v1075_v42, 0.0 }
 0x3da   : > { %1078 = vst [vmem:[%s181_s18] sm:$0xff] %v1077_v43 }
 0x3db   : > { %1438 = shalt.err (!%p1435_p10)
}
 0x3dc   : > { %1288 = dma.vmem_to_hbm [thread:$0]  (%p1572_p3), %s1093_s19, 128, %s1095_s21, %s1080_s22  }
 0x3dd PF: > { %s1106_s30 = sand.u32 1, %s1469_s9   ;;  %p1925_p12 = scmp.ge.s32.totalorder %s1481_s12, 2 }
 0x3de   : > { %s1107_s7 = scalar_lea.sflag [#allocation4], %s1106_s30 }
 0x3df   : > { %p1299_p13 = pnand %p1925_p12, %p1538_p6 }
 0x3e1   : > { %p1300_p0 = pneg %p1299_p13 }
 0x3e3   : > { %1464 = dma.done.wait (%p1300_p0), %s1107_s7, 128  }
 0x3e4   : > { %1466 = vsyncadd (%p1300_p0), %s1107_s7, 4294967168  ;;  %p16_p5 = scmp.ge.s32.totalorder %s1556_s23, 4   ;;  %s1926_s9 = smov %s1473_s10 }
 0x3e5   : > { %s1927_s10 = smov %s1477_s11  ;;  %s1928_s11 = smov %s1568_s28 }
 0x3e6   : > { %s1929_s12 = smov %s1556_s23  ;;  %18 = sbr.rel (!%p16_p5) target bundleno = 6 (0x6), region = 84 }
 0x3eb   :  { %1113 = vsyncpa [#allocation3], 1 }
 0x3ec   :  { %1115 = vsyncpa [#allocation3 + $0x1], 1 }
 0x3ed   :  { %1116 = vsyncpa [#allocation6], 1 }
 0x3ee   :  { %1117 = vsyncpa [#allocation4], 1 }
 0x3ef   :  { %1119 = vsyncpa [#allocation4 + $0x1], 1 }

</bundles_post_ra>
